<compile_context>
chip_gen: v6e
topology: v6e:2x2x1
jax: 0.10.0
libtpu: 0.0.40
codegen_flags: <defaults>
</compile_context>

<pallas_src>
import functools

import jax
import jax.numpy as jnp
from jax import lax
from jax.experimental import pallas as pl
from jax.experimental.pallas import tpu as pltpu


def _round_up(n: int, m: int) -> int:
    return ((n + m - 1) // m) * m


def _vmem_budget_bytes() -> int:
    """Per-core VMEM capacity minus ~8 MiB headroom (generation-aware)."""
    try:
        cap = int(pltpu.get_tpu_info().vmem_capacity_bytes)
    except Exception:
        cap = 64 << 20          # conservative fallback (v7x physical VMEM)
    return max(cap - (8 << 20), 16 << 20)


# -----------------------------------------------------------------------------
# Path 1: one-hot @ table on the MXU, vocabulary K-tiled with an f32 accumulator
# -----------------------------------------------------------------------------
def _embed_matmul_kernel(ids_ref, table_ref, out_ref, acc_ref):
    """One (token block, vocab chunk) grid step.

    ids_ref:   (TN, 1) int32  token ids for this block
    table_ref: (TK, E)        current vocabulary chunk (streams across k)
    out_ref:   (TN, E)        output block (written at last k step)
    acc_ref:   (TN, E) f32    accumulator scratch (persists across k)
    """
    k = pl.program_id(1)

    @pl.when(k == 0)
    def _init():
        acc_ref[...] = jnp.zeros_like(acc_ref)

    ids = ids_ref[...]                       # (TN, 1) int32
    tn = ids.shape[0]
    tk = table_ref.shape[0]
    # One-hot only for the current (TN, TK) vocab chunk, in the matmul dtype.
    local = ids - k * tk                     # id relative to this chunk
    iota = lax.broadcasted_iota(jnp.int32, (tn, tk), 1)
    one_hot = (local == iota).astype(table_ref.dtype)
    # HIGHEST precision keeps the 0/1 gather of f32 rows exact (no bf16 rounding).
    acc_ref[...] += jnp.dot(one_hot, table_ref[...],
                            precision=lax.Precision.HIGHEST,
                            preferred_element_type=jnp.float32)

    @pl.when(k == pl.num_programs(1) - 1)
    def _finalize():
        out_ref[...] = acc_ref[...].astype(out_ref.dtype)


def _matmul_forward(ids, table, *, tn, num_blocks, n_pad, max_vocab_chunk):
    V, E = table.shape
    dtype = table.dtype
    itemsize = jnp.dtype(dtype).itemsize

    # Vocab chunk: multiple of 256 (MXU K granularity on v6e/v7x, 2x v5e pass),
    # capped so live VMEM stays bounded no matter how large the vocabulary is.
    tk = min(max_vocab_chunk, _round_up(V, 256))
    v_pad = _round_up(V, tk)
    if v_pad != V:
        table = jnp.pad(table, ((0, v_pad - V), (0, 0)))
    num_k = v_pad // tk

    ids2 = ids.reshape(n_pad, 1)

    if num_k == 1:
        # Constant index_map -> fetched once; single-buffer it (halves VMEM).
        table_spec = pl.BlockSpec((tk, E), lambda i, k: (0, 0),
                                  pipeline_mode=pl.Buffered(1))
        table_bufs = 1
    else:
        table_spec = pl.BlockSpec((tk, E), lambda i, k: (k, 0))
        table_bufs = 2

    cost = pl.CostEstimate(
        flops=2 * n_pad * v_pad * E,
        transcendentals=0,
        bytes_accessed=(num_blocks if num_k > 1 else 1) * v_pad * E * itemsize
        + n_pad * 4 + n_pad * E * itemsize,
    )

    # Per-step VMEM estimate (bounded by TN/TK, independent of V).
    vmem_est = (table_bufs * tk * E * itemsize
                + 2 * (tn * 4 + tn * E * itemsize)   # ids + out double buffers
                + tn * E * 4                         # f32 accumulator
                + tn * tk * 4                        # one-hot intermediate
                + (1 << 20))                         # compiler scratch headroom
    compiler_kwargs = dict(dimension_semantics=("parallel", "arbitrary"))
    if vmem_est > (16 << 20):                        # default scoped limit (v5e)
        compiler_kwargs["vmem_limit_bytes"] = int(min(vmem_est, _vmem_budget_bytes()))

    return pl.pallas_call(
        _embed_matmul_kernel,
        out_shape=jax.ShapeDtypeStruct((n_pad, E), dtype),
        grid_spec=pltpu.PrefetchScalarGridSpec(
            num_scalar_prefetch=0,
            grid=(num_blocks, num_k),                # reduction (vocab) axis last
            in_specs=[
                pl.BlockSpec((tn, 1), lambda i, k: (i, 0)),
                table_spec,
            ],
            out_specs=pl.BlockSpec((tn, E), lambda i, k: (i, 0)),
            scratch_shapes=[pltpu.VMEM((tn, E), jnp.float32)],
        ),
        compiler_params=pltpu.CompilerParams(**compiler_kwargs),
        cost_estimate=cost,
    )(ids2, table)


# -----------------------------------------------------------------------------
# Path 2: large vocab -> table stays in HBM, one row DMA per token (true gather)
# -----------------------------------------------------------------------------
_GATHER_SEM_SLOTS = 16   # ring of DMA-completion semaphores per token block


def _embed_gather_kernel(ids_ref, table_ref, out_ref, buf_ref, sems):
    """ids_ref: (N_pad,) int32 SMEM (scalar prefetch); table_ref: (V, E) HBM;
    out_ref / buf_ref: (TN, E) VMEM; sems: ring of DMA semaphores."""
    i = pl.program_id(0)
    tn = out_ref.shape[0]
    base = i * tn

    @pl.loop(0, tn)
    def _issue(t):
        row = ids_ref[base + t]
        pltpu.make_async_copy(
            table_ref.at[pl.ds(row, 1), :],
            buf_ref.at[pl.ds(t, 1), :],
            sems.at[t % _GATHER_SEM_SLOTS],
        ).start()

    @pl.loop(0, tn)
    def _drain(t):
        pltpu.make_async_copy(
            table_ref.at[pl.ds(0, 1), :],            # only shape matters for wait()
            buf_ref.at[pl.ds(t, 1), :],
            sems.at[t % _GATHER_SEM_SLOTS],
        ).wait()

    out_ref[...] = buf_ref[...]


def _gather_forward(ids, table, *, tn, num_blocks, n_pad):
    V, E = table.shape
    dtype = table.dtype
    itemsize = jnp.dtype(dtype).itemsize

    cost = pl.CostEstimate(
        flops=0, transcendentals=0,
        bytes_accessed=n_pad * 4 + 2 * n_pad * E * itemsize,
    )

    return pl.pallas_call(
        _embed_gather_kernel,
        out_shape=jax.ShapeDtypeStruct((n_pad, E), dtype),
        grid_spec=pltpu.PrefetchScalarGridSpec(
            num_scalar_prefetch=1,                      # token ids -> SMEM
            grid=(num_blocks,),
            in_specs=[pl.BlockSpec(memory_space=pl.ANY)],  # table stays in HBM
            out_specs=pl.BlockSpec((tn, E), lambda i, ids_ref: (i, 0)),
            scratch_shapes=[
                pltpu.VMEM((tn, E), dtype),
                pltpu.SemaphoreType.DMA((_GATHER_SEM_SLOTS,)),
            ],
        ),
        compiler_params=pltpu.CompilerParams(dimension_semantics=("parallel",)),
        cost_estimate=cost,
    )(ids, table)


# -----------------------------------------------------------------------------
# Public wrapper
# -----------------------------------------------------------------------------
def categorical_encoder_forward(x, embedding_table, *,
                                block_tokens: int = 256,
                                max_vocab_chunk: int = 1024,
                                gather_min_vocab: int = 4096,
                                path: str = "auto"):
    """Pallas equivalent of CategoricalEncoder.forward: embedding_table[x, :].

    x: integer array of arbitrary shape (token ids; clamped to [0, V-1]).
    embedding_table: (V, E) float array (nn.Embedding weight).
    Returns x.shape + (E,) with embedding_table's dtype.
    """
    V, E = embedding_table.shape
    orig_shape = x.shape
    itemsize = jnp.dtype(embedding_table.dtype).itemsize

    ids = jnp.clip(x.reshape(-1).astype(jnp.int32), 0, V - 1)
    n = ids.shape[0]

    # Tokens per grid step: 256 by default (MXU M on v6e/v7x, multiple of 128
    # for v5e), shrunk to a sublane multiple for tiny inputs.
    tn = block_tokens if n > block_tokens else max(8, _round_up(max(n, 1), 8))
    n_pad = _round_up(n, tn)
    if n_pad != n:
        ids = jnp.pad(ids, (0, n_pad - n))             # pad with id 0 (valid row)
    num_blocks = n_pad // tn

    if path == "auto":
        # One-hot matmul re-reads the table per token block and burns O(N*V*E)
        # MXU flops; switch to the DMA row gather once the vocab is large (or
        # the K-tiled matmul working set would not fit the per-core VMEM).
        tk_guess = min(max_vocab_chunk, _round_up(V, 256))
        step_bytes = (2 * tk_guess * E * itemsize + tn * tk_guess * 4
                      + 3 * tn * E * max(itemsize, 4))
        use_gather = (V >= gather_min_vocab
                      or (step_bytes > (16 << 20)
                          and step_bytes > _vmem_budget_bytes()))
    else:
        use_gather = path == "gather"

    if use_gather:
        out = _gather_forward(ids, embedding_table,
                              tn=tn, num_blocks=num_blocks, n_pad=n_pad)
    else:
        out = _matmul_forward(ids, embedding_table,
                              tn=tn, num_blocks=num_blocks, n_pad=n_pad,
                              max_vocab_chunk=max_vocab_chunk)

    return out[:n].reshape(orig_shape + (E,))


if __name__ == "__main__":
    def run_case(name, key, V, E, x_shape, path):
        k_emb, k_x = jax.random.split(key)
        table = jax.random.normal(k_emb, (V, E), dtype=jnp.float32)
        x = jax.random.randint(k_x, x_shape, 0, V, dtype=jnp.int32)
        fwd = jax.jit(functools.partial(categorical_encoder_forward, path=path))
        out = jax.block_until_ready(fwd(x, table))
        ref = jnp.take(table, x, axis=0)
        assert out.shape == x_shape + (E,), name
        assert jnp.allclose(out, ref, rtol=1e-5, atol=1e-5), name

    root = jax.random.PRNGKey(0)
    k1, k2, k3 = jax.random.split(root, 3)
    # 1) Module-default sizes: len(field)=16, embedding_size=32, ids (2, 8).
    #    Single vocab chunk -> resident, single-buffered table.
    run_case("small", k1, V=16, E=32, x_shape=(2, 8), path="auto")
    # 2) Multi-chunk vocabulary -> exercises the K-tiled accumulator path.
    run_case("ktiled", k2, V=2048, E=32, x_shape=(2, 8), path="matmul")
    # 3) Large vocabulary -> exercises the HBM row-DMA gather path.
    run_case("gather", k3, V=4096, E=32, x_shape=(2, 8), path="gather")

    print("KERNEL_OK")
</pallas_src>

<mosaic_0001>
module attributes {stable_mosaic.version = 11 : i64} {
  func.func @_embed_matmul_kernel(%arg0: i32, %arg1: i32, %arg2: memref<16x1xi32, #tpu.memory_space<vmem>>, %arg3: memref<256x32xf32, #tpu.memory_space<vmem>>, %arg4: memref<16x32xf32, #tpu.memory_space<vmem>>, %arg5: memref<16x32xf32, #tpu.memory_space<vmem>>) attributes {dimension_semantics = [#tpu.dimension_semantics<parallel>, #tpu.dimension_semantics<arbitrary>], iteration_bounds = array<i64: 1, 1>, scalar_prefetch = 0 : i64, scratch_operands = 1 : i64, tpu.core_type = #tpu.core_type<tc>, window_params = [{transform_indices = @transform_0, window_bounds = array<i64: 16, 1>}, {pipeline_mode = #tpu.pipeline_mode<synchronous>, transform_indices = @transform_1, window_bounds = array<i64: 256, 32>}, {transform_indices = @transform_2, window_bounds = array<i64: 16, 32>}]} {
    %c0_i32 = arith.constant 0 : i32
    %0 = arith.cmpi eq, %arg1, %c0_i32 : i32
    %1 = arith.extui %0 : i1 to i32
    %c0_i32_0 = arith.constant 0 : i32
    %2 = arith.cmpi ne, %1, %c0_i32_0 : i32
    scf.if %2 {
      %cst_10 = arith.constant 0.000000e+00 : f32
      %20 = vector.broadcast %cst_10 : f32 to vector<16x32xf32>
      %c0_11 = arith.constant 0 : index
      %c0_12 = arith.constant 0 : index
      %21 = vector.load %arg5[%c0_11, %c0_12] : memref<16x32xf32, #tpu.memory_space<vmem>>, vector<16x32xf32>
      tpu.vector_store %arg5[%c0_11, %c0_12], %20 {strides = array<i32>} : memref<16x32xf32, #tpu.memory_space<vmem>>, vector<16x32xf32>,
    } else {
    }
    %c0 = arith.constant 0 : index
    %c0_1 = arith.constant 0 : index
    %3 = vector.load %arg2[%c0, %c0_1] : memref<16x1xi32, #tpu.memory_space<vmem>>, vector<16x1xi32>
    %c256_i32 = arith.constant 256 : i32
    %4 = arith.muli %arg1, %c256_i32 : i32
    %5 = vector.broadcast %4 : i32 to vector<16x1xi32>
    %6 = arith.subi %3, %5 : vector<16x1xi32>
    %7 = tpu.iota {dimensions = array<i32: 1>} : vector<16x256xi32>
    %8 = vector.broadcast %6 : vector<16x1xi32> to vector<16x256xi32>
    %9 = arith.cmpi eq, %8, %7 : vector<16x256xi32>
    %10 = arith.extui %9 : vector<16x256xi1> to vector<16x256xi32>
    %11 = arith.sitofp %10 : vector<16x256xi32> to vector<16x256xf32>
    %c0_2 = arith.constant 0 : index
    %c0_3 = arith.constant 0 : index
    %12 = vector.load %arg5[%c0_2, %c0_3] : memref<16x32xf32, #tpu.memory_space<vmem>>, vector<16x32xf32>
    %c0_4 = arith.constant 0 : index
    %c0_5 = arith.constant 0 : index
    %13 = vector.load %arg3[%c0_4, %c0_5] : memref<256x32xf32, #tpu.memory_space<vmem>>, vector<256x32xf32>
    %cst = arith.constant dense<0.000000e+00> : vector<16x32xf32>
    %14 = tpu.matmul %11, %13, %cst {dimension_numbers = #tpu.dot_dimension_numbers<[1], [0], [0], [1], [0, 0, 1, 1], [], []>, precision = #tpu.contract_precision<fp32>} : vector<16x256xf32>, vector<256x32xf32>, vector<16x32xf32> -> vector<16x32xf32>
    %15 = arith.addf %12, %14 : vector<16x32xf32>
    %c0_6 = arith.constant 0 : index
    %c0_7 = arith.constant 0 : index
    %16 = vector.load %arg5[%c0_6, %c0_7] : memref<16x32xf32, #tpu.memory_space<vmem>>, vector<16x32xf32>
    tpu.vector_store %arg5[%c0_6, %c0_7], %15 {strides = array<i32>} : memref<16x32xf32, #tpu.memory_space<vmem>>, vector<16x32xf32>,
    %c0_i32_8 = arith.constant 0 : i32
    %17 = arith.cmpi eq, %arg1, %c0_i32_8 : i32
    %18 = arith.extui %17 : i1 to i32
    %c0_i32_9 = arith.constant 0 : i32
    %19 = arith.cmpi ne, %18, %c0_i32_9 : i32
    scf.if %19 {
      %c0_10 = arith.constant 0 : index
      %c0_11 = arith.constant 0 : index
      %20 = vector.load %arg5[%c0_10, %c0_11] : memref<16x32xf32, #tpu.memory_space<vmem>>, vector<16x32xf32>
      %c0_12 = arith.constant 0 : index
      %c0_13 = arith.constant 0 : index
      %21 = vector.load %arg4[%c0_12, %c0_13] : memref<16x32xf32, #tpu.memory_space<vmem>>, vector<16x32xf32>
      tpu.vector_store %arg4[%c0_12, %c0_13], %20 {strides = array<i32>} : memref<16x32xf32, #tpu.memory_space<vmem>>, vector<16x32xf32>,
    } else {
    }
    return
  }
  func.func @transform_0(%arg0: i32, %arg1: i32) -> (i32, i32) {
    %c0_i32 = arith.constant 0 : i32
    %c0_i32_0 = arith.constant 0 : i32
    return %arg0, %c0_i32 : i32, i32
  }
  func.func @transform_1(%arg0: i32, %arg1: i32) -> (i32, i32) {
    %c0_i32 = arith.constant 0 : i32
    %c0_i32_0 = arith.constant 0 : i32
    %c0_i32_1 = arith.constant 0 : i32
    return %c0_i32, %c0_i32_0 : i32, i32
  }
  func.func @transform_2(%arg0: i32, %arg1: i32) -> (i32, i32) {
    %c0_i32 = arith.constant 0 : i32
    %c0_i32_0 = arith.constant 0 : i32
    return %arg0, %c0_i32 : i32, i32
  }
}

</mosaic_0001>

<bundles_post_ra>
// kernel: categorical_encoder_forward.1
= control target key start
LH: loop header
LB: loop body
LE: loop exit
PB: predicated region body
PF: predicated region fallthrough
CT: control target
= control target key end

     0   :  { %v1299_v2 = vmov 0   ;;  %s2017_s0 = inlined_call_operand.vmem [shape: s32[16,1], index: 0, kind: input, shape index: {}]   ;;  %s2018_s1 = inlined_call_operand.vmem [shape: f32[256,32], index: 1, kind: input, shape index: {}]   ;;  %s2019_s2 = inlined_call_operand.hbm [shape: f32[16,32], index: 2, kind: output, shape index: {}]  }
   0x1   :  { %v19_v0 = vld [vmem:[%s2017_s0] sm:$0xff]  ;;  %v79_v1 = vld [vmem:[%s2018_s1 + $0xf8] sm:$0xff]  ;;  %1276 = vset.pattern.permute.xlu0 %v1299_v2  ;;  %v78_v5 = vld [vmem:[%s2018_s1 + $0xf0] sm:$0xff] }
   0x2   :  { %v1326_v3 = vand.u32 4294901760, %v79_v1  ;;  %v63_v4 = vld [vmem:[%s2018_s1 + $0x78] sm:$0xff]  ;;  %v62_v6 = vld [vmem:[%s2018_s1 + $0x70] sm:$0xff]  ;;  %29 = vperm.xlu0 %1276, %v19_v0   ;;  %v1339_v8 = vand.u32 4294901760, %v78_v5  ;;  %v77_v10 = vld [vmem:[%s2018_s1 + $0xe8] sm:$0xff] }
   0x3   :  { %v1337_v7 = vand.u32 4294901760, %v63_v4  ;;  %v1341_v9 = vand.u32 4294901760, %v62_v6  ;;  %v61_v11 = vld [vmem:[%s2018_s1 + $0x68] sm:$0xff]  ;;  %v76_v12 = vld [vmem:[%s2018_s1 + $0xe0] sm:$0xff]  ;;  %v1358_v15 = vand.u32 4294901760, %v77_v10  ;;  %v75_v39 = vld [vmem:[%s2018_s1 + $0xd8] sm:$0xff] }
   0x4   :  { %v20_v13 = vld [vmem:[%s2017_s0 + $0x8] sm:$0xff]  ;;  %v1356_v14 = vsub.f32 %v79_v1, %v1326_v3  ;;  %v1360_v16 = vand.u32 4294901760, %v61_v11  ;;  %v1362_v17 = vand.u32 4294901760, %v76_v12  ;;  %v60_v18 = vld [vmem:[%s2018_s1 + $0x60] sm:$0xff]  ;;  %1042 = vmatprep.subr.mxu0 %v1326_v3  ;;  %v1372_v20 = vsub.f32 %v78_v5, %v1339_v8  ;;  %v59_v44 = vld [vmem:[%s2018_s1 + $0x58] sm:$0xff] }
   0x5   :  { %v1369_v19 = vsub.f32 %v63_v4, %v1337_v7  ;;  %v1375_v21 = vsub.f32 %v62_v6, %v1341_v9  ;;  %v1377_v22 = vand.u32 4294901760, %v60_v18  ;;  %1043 = vmatpush3.msra.mxu0 %v1337_v7  ;;  %v1382_v24 = vsub.f32 %v77_v10, %v1358_v15  ;;  %v74_v45 = vld [vmem:[%s2018_s1 + $0xd0] sm:$0xff]  ;;  %v73_v51 = vld [vmem:[%s2018_s1 + $0xc8] sm:$0xff]  ;;  %v72_v53 = vld [vmem:[%s2018_s1 + $0xc0] sm:$0xff] }
   0x6   :  { %2096 = vst [vmem:[#allocation6_spill] sm:$0xff] %v1356_v14  ;;  %v2041_v23 = vand.u32 4294901760, %v1356_v14  ;;  %v1385_v25 = vsub.f32 %v61_v11, %v1360_v16  ;;  %v1388_v26 = vsub.f32 %v76_v12, %v1362_v17  ;;  %1044 = vmatprep.subr.mxu0 %v1339_v8  ;;  %32 = vperm.xlu0 %1276, %v20_v13   ;;  %v2037_v28 = vand.u32 4294901760, %v1372_v20  ;;  %v58_v46 = vld [vmem:[%s2018_s1 + $0x50] sm:$0xff]  ;;  %v57_v52 = vld [vmem:[%s2018_s1 + $0x48] sm:$0xff]  ;;  %v56_v58 = vld [vmem:[%s2018_s1 + $0x40] sm:$0xff] }
   0x7   :  { %v2039_v27 = vand.u32 4294901760, %v1369_v19  ;;  %v2033_v29 = vand.u32 4294901760, %v1375_v21  ;;  %v1395_v30 = vsub.f32 %v60_v18, %v1377_v22  ;;  %1045 = vmatpush3.msra.mxu0 %v1341_v9  ;;  %v2032_v32 = vand.u32 4294901760, %v1382_v24 }
   0x8   :  { %v323_v31 = vsub.f32 %v1356_v14, %v2041_v23  ;;  %v2030_v33 = vand.u32 4294901760, %v1385_v25  ;;  %v2029_v34 = vand.u32 4294901760, %v1388_v26  ;;  %1046 = vmatprep.subr.mxu0 %v1358_v15  ;;  %v330_v36 = vsub.f32 %v1372_v20, %v2037_v28 }
   0x9   :  { %v211_v35 = vsub.f32 %v1369_v19, %v2039_v27  ;;  %v218_v37 = vsub.f32 %v1375_v21, %v2033_v29  ;;  %v2028_v38 = vand.u32 4294901760, %v1395_v30  ;;  %1047 = vmatpush3.msra.mxu0 %v1360_v16  ;;  %v337_v41 = vsub.f32 %v1382_v24, %v2032_v32 }
   0xa   :  { %v324_v40 = vand.u32 4294901760, %v323_v31  ;;  %v225_v42 = vsub.f32 %v1385_v25, %v2030_v33  ;;  %v344_v43 = vsub.f32 %v1388_v26, %v2029_v34  ;;  %1048 = vmatprep.subr.mxu0 %v1362_v17  ;;  %v331_v48 = vand.u32 4294901760, %v330_v36 }
   0xb   :  { %v212_v47 = vand.u32 4294901760, %v211_v35  ;;  %v219_v49 = vand.u32 4294901760, %v218_v37  ;;  %v232_v50 = vsub.f32 %v1395_v30, %v2028_v38  ;;  %1049 = vmatpush3.msra.mxu0 %v1377_v22  ;;  %v338_v54 = vand.u32 4294901760, %v337_v41 }
   0xc   :  { %1080 = vmatprep.subr.mxu1 %v324_v40  ;;  %v226_v55 = vand.u32 4294901760, %v225_v42  ;;  %v345_v56 = vand.u32 4294901760, %v344_v43  ;;  %v1451_v57 = vand.u32 4294901760, %v75_v39  ;;  %v1456_v60 = vand.u32 4294901760, %v59_v44 }
   0xd   :  { %1081 = vmatpush3.msra.mxu1 %v212_v47  ;;  %v233_v59 = vand.u32 4294901760, %v232_v50  ;;  %v1458_v61 = vand.u32 4294901760, %v74_v45  ;;  %v1460_v62 = vand.u32 4294901760, %v58_v46 }
   0xe   :  { %7 = vsyncpa [#allocation4], 0  ;;  %1082 = vmatprep.subr.mxu1 %v331_v48  ;;  %v1463_v63 = vsub.f32 %v75_v39, %v1451_v57  ;;  %v1465_v0 = vand.u32 4294901760, %v73_v51  ;;  %v1467_v1 = vand.u32 4294901760, %v57_v52  ;;  %v1469_v2 = vand.u32 4294901760, %v72_v53  ;;  %1050 = vmatprep.subr.mxu0 %v1451_v57  ;;  %v71_v47 = vld [vmem:[%s2018_s1 + $0xb8] sm:$0xff] }
   0xf   :  { %1083 = vmatpush3.msra.mxu1 %v219_v49  ;;  %v1473_v4 = vsub.f32 %v59_v44, %v1456_v60  ;;  %v1476_v5 = vsub.f32 %v74_v45, %v1458_v61  ;;  %v1479_v6 = vsub.f32 %v58_v46, %v1460_v62  ;;  %v1481_v10 = vand.u32 4294901760, %v56_v58  ;;  %1051 = vmatpush3.msra.mxu0 %v1456_v60  ;;  %v67_v29 = vld [vmem:[%s2018_s1 + $0x98] sm:$0xff] }
  0x10   :  { %1084 = vmatprep.subr.mxu1 %v338_v54  ;;  %v2027_v11 = vand.u32 4294901760, %v1463_v63  ;;  %v1486_v12 = vsub.f32 %v73_v51, %v1465_v0  ;;  %v1489_v13 = vsub.f32 %v57_v52, %v1467_v1  ;;  %v1492_v18 = vsub.f32 %v72_v53, %v1469_v2  ;;  %1052 = vmatprep.subr.mxu0 %v1458_v61  ;;  %v55_v52 = vld [vmem:[%s2018_s1 + $0x38] sm:$0xff]  ;;  %v70_v53 = vld [vmem:[%s2018_s1 + $0xb0] sm:$0xff] }
  0x11   :  { %1085 = vmatpush3.msra.mxu1 %v226_v55  ;;  %v2026_v31 = vand.u32 4294901760, %v1473_v4  ;;  %v2025_v35 = vand.u32 4294901760, %v1476_v5  ;;  %v2024_v36 = vand.u32 4294901760, %v1479_v6  ;;  %v1499_v37 = vsub.f32 %v56_v58, %v1481_v10  ;;  %1053 = vmatpush3.msra.mxu0 %v1460_v62  ;;  %v54_v54 = vld [vmem:[%s2018_s1 + $0x30] sm:$0xff]  ;;  %v51_v28 = vld [vmem:[%s2018_s1 + $0x18] sm:$0xff] }
  0x12   :  { %1086 = vmatprep.subr.mxu1 %v345_v56  ;;  %v351_v39 = vsub.f32 %v1463_v63, %v2027_v11  ;;  %v2022_v40 = vand.u32 4294901760, %v1486_v12  ;;  %v2021_v41 = vand.u32 4294901760, %v1489_v13  ;;  %v2020_v42 = vand.u32 4294901760, %v1492_v18  ;;  %1054 = vmatprep.subr.mxu0 %v1465_v0 }
  0x13   :  { %2097 = vst [vmem:[#allocation7_spill] sm:$0xff] %v1499_v37  ;;  %1087 = vmatpush3.msra.mxu1 %v233_v59  ;;  %v239_v43 = vsub.f32 %v1473_v4, %v2026_v31  ;;  %v358_v44 = vsub.f32 %v1476_v5, %v2025_v35  ;;  %v246_v45 = vsub.f32 %v1479_v6, %v2024_v36  ;;  %v2023_v46 = vand.u32 4294901760, %v1499_v37 }
  0x14   :  { %1055 = vmatpush3.msra.mxu0 %v1467_v1  ;;  %v352_v48 = vand.u32 4294901760, %v351_v39  ;;  %v365_v49 = vsub.f32 %v1486_v12, %v2022_v40  ;;  %v253_v50 = vsub.f32 %v1489_v13, %v2021_v41  ;;  %v372_v51 = vsub.f32 %v1492_v18, %v2020_v42  ;;  %v69_v39 = vld [vmem:[%s2018_s1 + $0xa8] sm:$0xff]  ;;  %v68_v41 = vld [vmem:[%s2018_s1 + $0xa0] sm:$0xff] }
  0x15   :  { %1056 = vmatprep.subr.mxu0 %v1469_v2  ;;  %v240_v55 = vand.u32 4294901760, %v239_v43  ;;  %v359_v56 = vand.u32 4294901760, %v358_v44  ;;  %v247_v58 = vand.u32 4294901760, %v246_v45  ;;  %v260_v59 = vsub.f32 %v1499_v37, %v2023_v46  ;;  %v53_v42 = vld [vmem:[%s2018_s1 + $0x28] sm:$0xff]  ;;  %v52_v46 = vld [vmem:[%s2018_s1 + $0x20] sm:$0xff] }
  0x16   :  { %1057 = vmatpush3.msra.mxu0 %v1481_v10  ;;  %1088 = vmatprep.subr.mxu1 %v352_v48  ;;  %v366_v43 = vand.u32 4294901760, %v365_v49  ;;  %v254_v44 = vand.u32 4294901760, %v253_v50  ;;  %v373_v45 = vand.u32 4294901760, %v372_v51  ;;  %v1555_v40 = vand.u32 4294901760, %v71_v47 }
  0x17   :  { %1089 = vmatpush3.msra.mxu1 %v240_v55  ;;  %v261_v36 = vand.u32 4294901760, %v260_v59  ;;  %v1560_v35 = vand.u32 4294901760, %v55_v52  ;;  %v1562_v31 = vand.u32 4294901760, %v70_v53  ;;  %v1564_v11 = vand.u32 4294901760, %v54_v54 }
  0x18   :  { %1090 = vmatprep.subr.mxu1 %v359_v56  ;;  %v1567_v48 = vsub.f32 %v71_v47, %v1555_v40  ;;  %v1569_v49 = vand.u32 4294901760, %v69_v39  ;;  %v1571_v50 = vand.u32 4294901760, %v53_v42  ;;  %v1573_v51 = vand.u32 4294901760, %v68_v41  ;;  %1058 = vmatprep.subr.mxu0 %v1555_v40 }
  0x19   :  { %1091 = vmatpush3.msra.mxu1 %v247_v58  ;;  %v1577_v55 = vsub.f32 %v55_v52, %v1560_v35  ;;  %v1580_v59 = vsub.f32 %v70_v53, %v1562_v31  ;;  %v1583_v56 = vsub.f32 %v54_v54, %v1564_v11  ;;  %v1585_v47 = vand.u32 4294901760, %v52_v46  ;;  %1059 = vmatpush3.msra.mxu0 %v1560_v35 }
  0x1a   :  { %2098 = vst [vmem:[#allocation8_spill] sm:$0xff] %v1567_v48  ;;  %1092 = vmatprep.subr.mxu1 %v366_v43  ;;  %v2031_v38 = vand.u32 4294901760, %v1567_v48  ;;  %v1590_v34 = vsub.f32 %v69_v39, %v1569_v49  ;;  %v1593_v58 = vsub.f32 %v53_v42, %v1571_v50  ;;  %v1596_v52 = vsub.f32 %v68_v41, %v1573_v51 }
  0x1b   :  { %2099 = vst [vmem:[#allocation9_spill] sm:$0xff] %v1577_v55  ;;  %2100 = vst [vmem:[#allocation10_spill] sm:$0xff] %v1580_v59  ;;  %1060 = vmatprep.subr.mxu0 %v1562_v31  ;;  %1093 = vmatpush3.msra.mxu1 %v254_v44  ;;  %v2034_v53 = vand.u32 4294901760, %v1577_v55  ;;  %v2035_v54 = vand.u32 4294901760, %v1580_v59  ;;  %v2036_v43 = vand.u32 4294901760, %v1583_v56  ;;  %v1603_v33 = vsub.f32 %v52_v46, %v1585_v47 }
  0x1c   :  { %2101 = vst [vmem:[#allocation11_spill] sm:$0xff] %v1583_v56  ;;  %2102 = vst [vmem:[#allocation12_spill] sm:$0xff] %v1590_v34  ;;  %1061 = vmatpush3.msra.mxu0 %v1564_v11  ;;  %1094 = vmatprep.subr.mxu1 %v373_v45  ;;  %v379_v41 = vsub.f32 %v1567_v48, %v2031_v38  ;;  %v2038_v42 = vand.u32 4294901760, %v1590_v34  ;;  %v2040_v39 = vand.u32 4294901760, %v1593_v58  ;;  %v2042_v44 = vand.u32 4294901760, %v1596_v52 }
  0x1d   :  { %2103 = vst [vmem:[#allocation13_spill] sm:$0xff] %v1593_v58  ;;  %2104 = vst [vmem:[#allocation14_spill] sm:$0xff] %v1596_v52  ;;  %1062 = vmatprep.subr.mxu0 %v1569_v49  ;;  %1095 = vmatpush3.msra.mxu1 %v261_v36  ;;  %v267_v46 = vsub.f32 %v1577_v55, %v2034_v53  ;;  %v386_v45 = vsub.f32 %v1580_v59, %v2035_v54  ;;  %v2049_v32 = vand.u32 4294901760, %v1603_v33  ;;  %vm16_vm4 = vcmask 261120  }
  0x1e   :  { %2105 = vst [vmem:[#allocation15_spill] sm:$0xff] %v1603_v33  ;;  %v274_v38 = vsub.f32 %v1583_v56, %v2036_v43  ;;  %1063 = vmatpush3.msra.mxu0 %v1571_v50  ;;  %v380_v36 = vand.u32 4294901760, %v379_v41  ;;  %v393_v53 = vsub.f32 %v1590_v34, %v2038_v42  ;;  %v281_v54 = vsub.f32 %v1593_v58, %v2040_v39  ;;  %v66_v41 = vld [vmem:[%s2018_s1 + $0x90] sm:$0xff]  ;;  %v49_v58 = vld [vmem:[%s2018_s1 + $0x8] sm:$0xff]  ;;  %v64_v34 = vld [vmem:[%s2018_s1 + $0x80] sm:$0xff] }
  0x1f   :  { %v400_v43 = vsub.f32 %v1596_v52, %v2042_v44  ;;  %v50_v42 = vld [vmem:[%s2018_s1 + $0x10] sm:$0xff]  ;;  %1064 = vmatprep.subr.mxu0 %v1573_v51  ;;  %v268_v27 = vand.u32 4294901760, %v267_v46  ;;  %v387_v39 = vand.u32 4294901760, %v386_v45  ;;  %v288_v44 = vsub.f32 %v1603_v33, %v2049_v32  ;;  %v65_v52 = vld [vmem:[%s2018_s1 + $0x88] sm:$0xff] }
  0x20   :  { %v275_v23 = vand.u32 4294901760, %v274_v38  ;;  %1065 = vmatpush3.msra.mxu0 %v1585_v47  ;;  %1096 = vmatprep.subr.mxu1 %v380_v36  ;;  %v394_v38 = vand.u32 4294901760, %v393_v53  ;;  %v282_v46 = vand.u32 4294901760, %v281_v54  ;;  %v1659_v45 = vand.u32 4294901760, %v67_v29 }
  0x21   :  { %1097 = vmatpush3.msra.mxu1 %v268_v27  ;;  %v401_v32 = vand.u32 4294901760, %v400_v43  ;;  %v1661_v33 = vand.u32 4294901760, %v51_v28  ;;  %v1663_v56 = vand.u32 4294901760, %v66_v41  ;;  %v1665_v59 = vand.u32 4294901760, %v50_v42 }
  0x22   :  { %1098 = vmatprep.subr.mxu1 %v387_v39  ;;  %v1668_v55 = vsub.f32 %v67_v29, %v1659_v45  ;;  %v1670_v48 = vand.u32 4294901760, %v65_v52  ;;  %v1672_v37 = vand.u32 4294901760, %v49_v58  ;;  %v1674_v53 = vand.u32 4294901760, %v64_v34  ;;  %1066 = vmatprep.subr.mxu0 %v1659_v45 }
  0x23   :  { %2106 = vst [vmem:[#allocation16_spill] sm:$0xff] %v1663_v56  ;;  %2107 = vst [vmem:[#allocation17_spill] sm:$0xff] %v1665_v59  ;;  %1099 = vmatpush3.msra.mxu1 %v275_v23  ;;  %v289_v27 = vand.u32 4294901760, %v288_v44  ;;  %v1678_v54 = vsub.f32 %v51_v28, %v1661_v33  ;;  %v1681_v43 = vsub.f32 %v66_v41, %v1663_v56  ;;  %1067 = vmatpush3.msra.mxu0 %v1661_v33  ;;  %v48_v44 = vld [vmem:[%s2018_s1] sm:$0xff]  ;;  %s1302_s1 = smov [#allocation3]  }
  0x24   :  { %2108 = vst [vmem:[#allocation18_spill] sm:$0xff] %v1668_v55  ;;  %2109 = vst [vmem:[#allocation19_spill] sm:$0xff] %v1670_v48  ;;  %v1684_v39 = vsub.f32 %v50_v42, %v1665_v59  ;;  %1100 = vmatprep.subr.mxu1 %v394_v38  ;;  %v2064_v29 = vand.u32 4294901760, %v1668_v55  ;;  %v1689_v36 = vsub.f32 %v65_v52, %v1670_v48  ;;  %1068 = vmatprep.subr.mxu0 %v1663_v56  ;;  %s1015_s19 = sshll.u32 %s1302_s1, 4  ;;  %s1016_s19 = int_to_ptr.vmem [resolvable:$true] %s1015_s19 }
  0x25   :  { %2110 = vst [vmem:[#allocation20_spill] sm:$0xff] %v1672_v37  ;;  %2111 = vst [vmem:[#allocation21_spill] sm:$0xff] %v1674_v53  ;;  %v1692_v23 = vsub.f32 %v49_v58, %v1672_v37  ;;  %v1695_v28 = vsub.f32 %v64_v34, %v1674_v53  ;;  %1101 = vmatpush3.msra.mxu1 %v282_v46  ;;  %v2067_v42 = vand.u32 4294901760, %v1678_v54  ;;  %v2070_v41 = vand.u32 4294901760, %v1681_v43  ;;  %s1277_s20 = scalar_lea.vmem %s1016_s19, 256  ;;  %p1282_p1 = scmp.lt.s32.totalorder %s1016_s19, %s1016_s19 }
  0x26   :  { %2112 = vst [vmem:[#allocation22_spill] sm:$0xff] %v1678_v54  ;;  %2113 = vst [vmem:[#allocation23_spill] sm:$0xff] %v1681_v43  ;;  %v2071_v52 = vand.u32 4294901760, %v1684_v39  ;;  %1069 = vmatpush3.msra.mxu0 %v1665_v59  ;;  %1102 = vmatprep.subr.mxu1 %v401_v32  ;;  %v407_v34 = vsub.f32 %v1668_v55, %v2064_v29  ;;  %v1721_v58 = vand.u32 4294901760, %v48_v44  ;;  %v2116_v38 = vand.u32 4294901760, %v1689_v36  ;;  %p1278_p0 = scmp.ne.s32.totalorder %s1016_s19, %s1277_s20  ;;  %p1283_p2 = scmp.lt.s32.totalorder %s1277_s20, %s1277_s20 }
  0x27   :  { %2114 = vst [vmem:[#allocation24_spill] sm:$0xff] %v1684_v39  ;;  %1070 = vmatprep.subr.mxu0 %v1670_v48  ;;  %1103 = vmatpush3.msra.mxu1 %v289_v27  ;;  %v295_v46 = vsub.f32 %v1678_v54, %v2067_v42  ;;  %v414_v32 = vsub.f32 %v1681_v43, %v2070_v41  ;;  %v2117_v55 = vand.u32 4294901760, %v1692_v23  ;;  %v2118_v54 = vand.u32 4294901760, %v1695_v28 }
  0x28   :  { %v302_v29 = vsub.f32 %v1684_v39, %v2071_v52  ;;  %2115 = vst [vmem:[#allocation25_spill] sm:$0xff] %v1721_v58  ;;  %1071 = vmatpush3.msra.mxu0 %v1672_v37  ;;  %v408_v56 = vand.u32 4294901760, %v407_v34  ;;  %v421_v27 = vsub.f32 %v1689_v36, %v2116_v38  ;;  %v1735_v37 = vsub.f32 %v48_v44, %v1721_v58  ;;  %p1284_p3 = por %p1283_p2, %p1282_p1 }
  0x29   :  { %v309_v42 = vsub.f32 %v1692_v23, %v2117_v55  ;;  %v428_v41 = vsub.f32 %v1695_v28, %v2118_v54  ;;  %1072 = vmatprep.subr.mxu0 %v1674_v53  ;;  %v296_v52 = vand.u32 4294901760, %v295_v46  ;;  %v415_v39 = vand.u32 4294901760, %v414_v32 }
  0x2a   :  { %v303_v43 = vand.u32 4294901760, %v302_v29  ;;  %2119 = vst [vmem:[#allocation26_spill] sm:$0xff] %v1735_v37  ;;  %1073 = vmatpush3.msra.mxu0 %v1721_v58  ;;  %1104 = vmatprep.subr.mxu1 %v408_v56  ;;  %v422_v34 = vand.u32 4294901760, %v421_v27  ;;  %v2078_v38 = vand.u32 4294901760, %v1735_v37  ;;  %v25_v56 = vlaneseq  ;;  %p1285_p4 = pnand %p1284_p3, %p1278_p0 }
  0x2b   :  { %1118 = vmatprep.subr.mxu0 %v1356_v14  ;;  %1105 = vmatpush3.msra.mxu1 %v296_v52  ;;  %v310_v55 = vand.u32 4294901760, %v309_v42  ;;  %v429_v54 = vand.u32 4294901760, %v428_v41  ;;  %v2084_v32 = vmov 1.0  }
  0x2c   :  { %1106 = vmatprep.subr.mxu1 %v415_v39  ;;  %v316_v29 = vsub.f32 %v1735_v37, %v2078_v38  ;;  %v1744_v46 = vand.u32 127, %v25_v56 }
  0x2d   :  { %1107 = vmatpush3.msra.mxu1 %v303_v43  ;;  %v2079_v43 = vmov 0.0  }
  0x2e   :  { %1108 = vmatprep.subr.mxu1 %v422_v34  ;;  %v317_v44 = vand.u32 4294901760, %v316_v29  ;;  %2120 = vst [vmem:[#allocation27_spill] sm:$0xff] %v1744_v46  ;;  %v1747_v42 = vadd.s32 128, %v1744_v46 }
  0x2f   :  { %1109 = vmatpush3.msra.mxu1 %v310_v55 }
  0x30   :  { %1110 = vmatprep.subr.mxu1 %v429_v54 }
  0x31   :  { %1111 = vmatpush3.msra.mxu1 %v317_v44 }
  0x32   :  { %1156 = vmatprep.subr.mxu1 %v1326_v3 }
  0x7d   :  { %v1749_v39 = vpop.permute.xlu0 %29 }
  0x7e   :  { %vm34_vm0 = vcmp.eq.s32.totalorder %v1749_v39, %v1744_v46  ;;  %vm35_vm1 = vcmp.eq.s32.totalorder %v1749_v39, %v1747_v42 }
  0x7f   :  { %v1026_v41 = vsel %vm34_vm0, 1.0, %v2079_v43  ;;  %v1027_v52 = vsel %vm35_vm1, 1.0, %v2079_v43  ;;  %1030 = vmatprep.mubr.msk.f32.mxu1 %vm35_vm1, %v2084_v32 }
  0x80   :  { %v177_v27 = vsub.f32 %v1027_v52, %v1027_v52  ;;  %v1767_v34 = vsub.f32 %v1026_v41, %v1026_v41  ;;  %1031 = vmatmul.mubr.msk.f32.vlgmr.msra.gmra.mxu1 %vm34_vm0, %v2084_v32 }
  0x81   :  { %1157 = vmatpush3.msra.mxu1 %v1337_v7  ;;  %v1774_v55 = vpop.permute.xlu0 %32 }
  0x82   :  { %2121 = vst [vmem:[#allocation28_spill] sm:$0xff] %v1774_v55  ;;  %1158 = vmatprep.subr.mxu1 %v1339_v8  ;;  %vm36_vm2 = vcmp.eq.s32.totalorder %v1774_v55, %v1744_v46  ;;  %vm37_vm3 = vcmp.eq.s32.totalorder %v1774_v55, %v1747_v42  ;;  %v178_v54 = vand.u32 4294901760, %v177_v27  ;;  %v2086_v29 = vand.u32 4294901760, %v1767_v34  ;;  %v2131_v55 = vld [vmem:[#allocation14_spill] sm:$0xff]  ;;  %v2132_v46 = vld [vmem:[#allocation15_spill] sm:$0xff] }
  0x83   :  { %v1028_v44 = vsel %vm36_vm2, 1.0, %v2079_v43  ;;  %v1029_v56 = vsel %vm37_vm3, 1.0, %v2079_v43  ;;  %1159 = vmatpush3.msra.mxu1 %v1341_v9  ;;  %1032 = vmatprep.mubr.msk.f32.mxu1 %vm37_vm3, %v2084_v32 }
  0x84   :  { %v1795_v41 = vsub.f32 %v1029_v56, %v1029_v56  ;;  %v1797_v52 = vsub.f32 %v1028_v44, %v1028_v44  ;;  %1160 = vmatprep.subr.mxu1 %v1358_v15  ;;  %1033 = vmatmul.mubr.msk.f32.gmra.mxu1 %vm36_vm2, %v2084_v32  ;;  %v179_v38 = vsub.f32 %v177_v27, %v178_v54 }
  0x85   :  { %1161 = vmatpush3.msra.mxu1 %v1360_v16  ;;  %692 = vmatprep.mubr.f32.mxu1 %v178_v54  ;;  %v185_v43 = vsub.f32 %v1767_v34, %v2086_v29 }
  0x86   :  { %1162 = vmatprep.subr.mxu1 %v1362_v17  ;;  %v180_v56 = vand.u32 4294901760, %v179_v38  ;;  %v193_v44 = vand.u32 4294901760, %v1795_v41  ;;  %v2087_v14 = vand.u32 4294901760, %v1797_v52 }
  0x87   :  { %1163 = vmatpush3.msra.mxu1 %v1377_v22  ;;  %v186_v37 = vand.u32 4294901760, %v185_v43  ;;  %v2123_v43 = vld [vmem:[#allocation8_spill] sm:$0xff] }
  0x88   :  { %1164 = vmatprep.subr.mxu1 %v1451_v57  ;;  %181 = vmatprep.mubr.f32.mxu0 %v180_v56  ;;  %v194_v32 = vsub.f32 %v1795_v41, %v193_v44  ;;  %v200_v54 = vsub.f32 %v1797_v52, %v2087_v14  ;;  %v2127_v56 = vld [vmem:[#allocation11_spill] sm:$0xff]  ;;  %v2130_v14 = vld [vmem:[#allocation13_spill] sm:$0xff] }
  0x89   :  { %1165 = vmatpush3.msra.mxu1 %v1456_v60  ;;  %187 = vmatmul.mubr.f32.vlgmr.msra.gmra.mxu0 %v186_v37  ;;  %v2122_v37 = vld [vmem:[#allocation7_spill] sm:$0xff] }
  0x8a   :  { %1119 = vmatpush3.msra.mxu0 %v1369_v19  ;;  %1166 = vmatprep.subr.mxu1 %v1458_v61  ;;  %v195_v38 = vand.u32 4294901760, %v194_v32  ;;  %v201_v29 = vand.u32 4294901760, %v200_v54  ;;  %v2124_v32 = vld [vmem:[#allocation9_spill] sm:$0xff]  ;;  %v2128_v54 = vld [vmem:[#allocation12_spill] sm:$0xff] }
  0x8b   :  { %1120 = vmatprep.subr.mxu0 %v1372_v20  ;;  %1167 = vmatpush3.msra.mxu1 %v1460_v62 }
  0x8c   :  { %1121 = vmatpush3.msra.mxu0 %v1375_v21  ;;  %1168 = vmatprep.subr.mxu1 %v1465_v0 }
  0x8d   :  { %196 = vmatprep.mubr.f32.mxu0 %v195_v38  ;;  %1122 = vmatprep.subr.mxu0 %v1382_v24  ;;  %v2129_v38 = vld [vmem:[#allocation20_spill] sm:$0xff] }
  0x8e   :  { %1169 = vmatpush3.msra.mxu1 %v1467_v1  ;;  %202 = vmatmul.mubr.f32.gmra.mxu0 %v201_v29  ;;  %v2126_v29 = vld [vmem:[#allocation10_spill] sm:$0xff] }
  0x8f   :  { %1123 = vmatpush3.msra.mxu0 %v1385_v25  ;;  %1170 = vmatprep.subr.mxu1 %v1469_v2 }
  0x90   :  { %1124 = vmatprep.subr.mxu0 %v1388_v26  ;;  %576 = vmatprep.mubr.f32.mxu0 %v177_v27  ;;  %v2125_v27 = vld [vmem:[#allocation16_spill] sm:$0xff] }
  0x91   :  { %1171 = vmatpush3.msra.mxu1 %v1481_v10  ;;  %1125 = vmatpush3.msra.mxu0 %v1395_v30 }
  0x92   :  { %1172 = vmatprep.subr.mxu1 %v1555_v40  ;;  %1126 = vmatprep.subr.mxu0 %v1463_v63 }
  0x93   :  { %1173 = vmatpush3.msra.mxu1 %v1560_v35  ;;  %1127 = vmatpush3.msra.mxu0 %v1473_v4 }
  0x94   :  { %1174 = vmatprep.subr.mxu1 %v1562_v31  ;;  %1128 = vmatprep.subr.mxu0 %v1476_v5 }
  0x95   :  { %1175 = vmatpush3.msra.mxu1 %v1564_v11  ;;  %1129 = vmatpush3.msra.mxu0 %v1479_v6 }
  0x96   :  { %1176 = vmatprep.subr.mxu1 %v1569_v49  ;;  %1130 = vmatprep.subr.mxu0 %v1486_v12 }
  0x97   :  { %1177 = vmatpush3.msra.mxu1 %v1571_v50  ;;  %1131 = vmatpush3.msra.mxu0 %v1489_v13 }
  0x98   :  { %1178 = vmatprep.subr.mxu1 %v1573_v51  ;;  %1132 = vmatprep.subr.mxu0 %v1492_v18 }
  0x99   :  { %1179 = vmatpush3.msra.mxu1 %v1585_v47  ;;  %1133 = vmatpush3.msra.mxu0 %v2122_v37 }
  0x9a   :  { %1180 = vmatprep.subr.mxu1 %v1659_v45  ;;  %1134 = vmatprep.subr.mxu0 %v2123_v43 }
  0x9b   :  { %1181 = vmatpush3.msra.mxu1 %v1661_v33  ;;  %1135 = vmatpush3.msra.mxu0 %v2124_v32 }
  0x9c   :  { %1182 = vmatprep.subr.mxu1 %v2125_v27  ;;  %1136 = vmatprep.subr.mxu0 %v2126_v29 }
  0x9d   :  { %1183 = vmatpush3.msra.mxu1 %v1665_v59  ;;  %1137 = vmatpush3.msra.mxu0 %v2127_v56  ;;  %v2133_v59 = vand.u32 4294901760, %v1767_v34 }
  0x9e   :  { %1184 = vmatprep.subr.mxu1 %v1670_v48  ;;  %1138 = vmatprep.subr.mxu0 %v2128_v54  ;;  %v2134_v48 = vld [vmem:[#allocation18_spill] sm:$0xff] }
  0x9f   :  { %1185 = vmatpush3.msra.mxu1 %v2129_v38  ;;  %1139 = vmatpush3.msra.mxu0 %v2130_v14  ;;  %v2135_v38 = vld [vmem:[#allocation22_spill] sm:$0xff] }
  0xa0   :  { %1186 = vmatprep.subr.mxu1 %v1674_v53  ;;  %1140 = vmatprep.subr.mxu0 %v2131_v55  ;;  %v2136_v53 = vld [vmem:[#allocation23_spill] sm:$0xff] }
  0xa1   :  { %1187 = vmatpush3.msra.mxu1 %v1721_v58  ;;  %1141 = vmatpush3.msra.mxu0 %v2132_v46  ;;  %v2137_v58 = vld [vmem:[#allocation24_spill] sm:$0xff]  ;;  %v2138_v46 = vand.u32 4294901760, %v1797_v52 }
  0xa2   :  { %696 = vmatmul.mubr.f32.vlgmr.msra.gmra.mxu1 %v2133_v59  ;;  %1232 = vmatprep.subr.mxu1 %v1326_v3  ;;  %v2139_v3 = vmov 1.0   ;;  %v2179_v59 = vand.u32 4294901760, %v1692_v23 }
  0xa3   :  { %1142 = vmatprep.subr.mxu0 %v2134_v48  ;;  %703 = vmatprep.mubr.f32.mxu1 %v193_v44 }
  0xa4   :  { %1233 = vmatpush3.msra.mxu1 %v1337_v7  ;;  %1143 = vmatpush3.msra.mxu0 %v2135_v38  ;;  %v2140_v7 = vld [vmem:[#allocation26_spill] sm:$0xff] }
  0xa5   :  { %1234 = vmatprep.subr.mxu1 %v1339_v8  ;;  %1144 = vmatprep.subr.mxu0 %v2136_v53  ;;  %v2141_v8 = vld [vmem:[#allocation6_spill] sm:$0xff] }
  0xa6   :  { %1235 = vmatpush3.msra.mxu1 %v1341_v9  ;;  %1145 = vmatpush3.msra.mxu0 %v2137_v58  ;;  %v2142_v9 = vand.u32 4294901760, %v2141_v8 }
  0xa7   :  { %707 = vmatmul.mubr.f32.gmra.mxu1 %v2138_v46  ;;  %1236 = vmatprep.subr.mxu1 %v1358_v15  ;;  %v2143_v15 = vand.u32 4294901760, %v1369_v19  ;;  %v2147_v19 = vand.u32 4294901760, %v1385_v25  ;;  %v2151_v25 = vand.u32 4294901760, %v1473_v4  ;;  %v2162_v4 = vand.u32 4294901760, %v2127_v56 }
  0xa8   :  { %1146 = vmatprep.subr.mxu0 %v1689_v36  ;;  %1237 = vmatpush3.msra.mxu1 %v1360_v16  ;;  %v2144_v16 = vand.u32 4294901760, %v1372_v20  ;;  %v2148_v20 = vand.u32 4294901760, %v1388_v26  ;;  %v2152_v26 = vand.u32 4294901760, %v1476_v5  ;;  %v2163_v5 = vld [vmem:[#allocation19_spill] sm:$0xff] }
  0xa9   :  { %1038 = vmatprep.mubr.msk.f32.mxu1 %vm35_vm1, %v2139_v3  ;;  %1147 = vmatpush3.msra.mxu0 %v1692_v23 }
  0xaa   :  { %1238 = vmatprep.subr.mxu1 %v1362_v17  ;;  %1148 = vmatprep.subr.mxu0 %v1695_v28  ;;  %v2145_v17 = vand.u32 4294901760, %v1375_v21  ;;  %v2149_v21 = vand.u32 4294901760, %v1395_v30  ;;  %v2153_v30 = vand.u32 4294901760, %v1479_v6  ;;  %v2164_v6 = vand.u32 4294901760, %v2128_v54 }
  0xab   :  { %1239 = vmatpush3.msra.mxu1 %v1377_v22  ;;  %1149 = vmatpush3.msra.mxu0 %v2140_v7  ;;  %v2146_v22 = vand.u32 4294901760, %v1382_v24  ;;  %v2150_v24 = vand.u32 4294901760, %v1463_v63  ;;  %v2158_v63 = vand.u32 4294901760, %v2123_v43 }
  0xac   :  { %1240 = vmatprep.subr.mxu1 %v1451_v57  ;;  %579 = vmatmul.mubr.f32.vlgmr.msra.gmra.mxu0 %v1767_v34  ;;  %v2154_v57 = vand.u32 4294901760, %v1486_v12  ;;  %v2168_v12 = vand.u32 4294901760, %v2131_v55 }
  0xad   :  { %1194 = vmatprep.subr.mxu0 %v2142_v9  ;;  %1241 = vmatpush3.msra.mxu1 %v1456_v60  ;;  %v2155_v60 = vand.u32 4294901760, %v1489_v13  ;;  %v2169_v13 = vld [vmem:[#allocation25_spill] sm:$0xff] }
  0xae   :  { %585 = vmatprep.mubr.f32.mxu0 %v1795_v41  ;;  %1195 = vmatpush3.msra.mxu0 %v2143_v15 }
  0xaf   :  { %1242 = vmatprep.subr.mxu1 %v1458_v61  ;;  %1196 = vmatprep.subr.mxu0 %v2144_v16  ;;  %v2156_v61 = vand.u32 4294901760, %v1492_v18  ;;  %v2170_v18 = vld [vmem:[#allocation15_spill] sm:$0xff] }
  0xb0   :  { %1243 = vmatpush3.msra.mxu1 %v1460_v62  ;;  %1197 = vmatpush3.msra.mxu0 %v2145_v17  ;;  %v2157_v62 = vand.u32 4294901760, %v2122_v37 }
  0xb1   :  { %1244 = vmatprep.subr.mxu1 %v1465_v0  ;;  %588 = vmatmul.mubr.f32.gmra.mxu0 %v1797_v52  ;;  %v2159_v0 = vand.u32 4294901760, %v2124_v32 }
  0xb2   :  { %1198 = vmatprep.subr.mxu0 %v2146_v22  ;;  %1245 = vmatpush3.msra.mxu1 %v1467_v1  ;;  %v2160_v1 = vand.u32 4294901760, %v2126_v29 }
  0xb3   :  { %1199 = vmatpush3.msra.mxu0 %v2147_v19  ;;  %1034 = vmatprep.mubr.msk.f32.mxu0 %vm35_vm1, %v2139_v3 }
  0xb4   :  { %1246 = vmatprep.subr.mxu1 %v1469_v2  ;;  %1200 = vmatprep.subr.mxu0 %v2148_v20  ;;  %v2161_v2 = vld [vmem:[#allocation17_spill] sm:$0xff] }
  0xb5   :  { %1247 = vmatpush3.msra.mxu1 %v1481_v10  ;;  %1201 = vmatpush3.msra.mxu0 %v2149_v21  ;;  %v2165_v10 = vld [vmem:[#allocation20_spill] sm:$0xff] }
  0xb6   :  { %1248 = vmatprep.subr.mxu1 %v1555_v40  ;;  %1202 = vmatprep.subr.mxu0 %v2150_v24  ;;  %v2173_v40 = vand.u32 4294901760, %v2134_v48  ;;  %v2178_v48 = vand.u32 4294901760, %v1689_v36 }
  0xb7   :  { %1249 = vmatpush3.msra.mxu1 %v1560_v35  ;;  %1203 = vmatpush3.msra.mxu0 %v2151_v25 }
  0xb8   :  { %1250 = vmatprep.subr.mxu1 %v1562_v31  ;;  %1204 = vmatprep.subr.mxu0 %v2152_v26  ;;  %v2171_v31 = vand.u32 4294901760, %v2170_v18 }
  0xb9   :  { %1251 = vmatpush3.msra.mxu1 %v1564_v11  ;;  %1205 = vmatpush3.msra.mxu0 %v2153_v30  ;;  %v2167_v11 = vld [vmem:[#allocation21_spill] sm:$0xff] }
  0xba   :  { %1252 = vmatprep.subr.mxu1 %v1569_v49  ;;  %1206 = vmatprep.subr.mxu0 %v2154_v57  ;;  %v2175_v49 = vand.u32 4294901760, %v2135_v38 }
  0xbb   :  { %1253 = vmatpush3.msra.mxu1 %v1571_v50  ;;  %1207 = vmatpush3.msra.mxu0 %v2155_v60  ;;  %v2176_v50 = vand.u32 4294901760, %v2136_v53  ;;  %v2182_v53 = vmov 0.0  }
  0xbc   :  { %1254 = vmatprep.subr.mxu1 %v1573_v51  ;;  %1208 = vmatprep.subr.mxu0 %v2156_v61  ;;  %v2177_v51 = vand.u32 4294901760, %v2137_v58  ;;  %17 = vst.msk [vmem:[#allocation2] sm:$0xff] %vm16_vm4, %v2182_v53  ;;  %18 = vst.msk [vmem:[#allocation2 + $0x8] sm:$0xff] %vm16_vm4, %v2182_v53 }
  0xbd   :  { %1255 = vmatpush3.msra.mxu1 %v1585_v47  ;;  %1209 = vmatpush3.msra.mxu0 %v2157_v62  ;;  %v2180_v47 = vand.u32 4294901760, %v1695_v28 }
  0xbe   :  { %1256 = vmatprep.subr.mxu1 %v1659_v45  ;;  %1210 = vmatprep.subr.mxu0 %v2158_v63  ;;  %v2181_v45 = vand.u32 4294901760, %v2140_v7 }
  0xbf   :  { %1257 = vmatpush3.msra.mxu1 %v1661_v33  ;;  %1211 = vmatpush3.msra.mxu0 %v2159_v0  ;;  %v2166_v33 = vand.u32 4294901760, %v2130_v14 }
  0xc0   :  { %1258 = vmatprep.subr.mxu1 %v2125_v27  ;;  %1212 = vmatprep.subr.mxu0 %v2160_v1 }
  0xc1   :  { %1259 = vmatpush3.msra.mxu1 %v2161_v2  ;;  %1213 = vmatpush3.msra.mxu0 %v2162_v4 }
  0xc2   :  { %1260 = vmatprep.subr.mxu1 %v2163_v5  ;;  %1214 = vmatprep.subr.mxu0 %v2164_v6 }
  0xc3   :  { %1261 = vmatpush3.msra.mxu1 %v2165_v10  ;;  %1215 = vmatpush3.msra.mxu0 %v2166_v33  ;;  %v46_v63 = vld [vmem:[#allocation2] sm:$0xff]  ;;  %v47_v33 = vld [vmem:[#allocation2 + $0x8] sm:$0xff] }
  0xc4   :  { %1262 = vmatprep.subr.mxu1 %v2167_v11  ;;  %1216 = vmatprep.subr.mxu0 %v2168_v12 }
  0xc5   :  { %1263 = vmatpush3.msra.mxu1 %v2169_v13  ;;  %1217 = vmatpush3.msra.mxu0 %v2171_v31 }
  0xc6   :  { %1039 = vmatmul.mubr.msk.f32.vlgmr.msra.gmra.mxu1 %vm34_vm0, %v2139_v3  ;;  %1218 = vmatprep.subr.mxu0 %v2173_v40 }
  0xc7   :  { %1040 = vmatprep.mubr.msk.f32.mxu1 %vm37_vm3, %v2139_v3  ;;  %1219 = vmatpush3.msra.mxu0 %v2175_v49 }
  0xc8   :  { %1220 = vmatprep.subr.mxu0 %v2176_v50 }
  0xc9   :  { %1221 = vmatpush3.msra.mxu0 %v2177_v51 }
  0xca   :  { %1041 = vmatmul.mubr.msk.f32.gmra.mxu1 %vm36_vm2, %v2139_v3  ;;  %1222 = vmatprep.subr.mxu0 %v2178_v48 }
  0xcb   :  { %1223 = vmatpush3.msra.mxu0 %v2179_v59 }
  0xcc   :  { %1224 = vmatprep.subr.mxu0 %v2180_v47 }
  0xcd   :  { %1225 = vmatpush3.msra.mxu0 %v2181_v45 }
  0xce   :  { %1035 = vmatmul.mubr.msk.f32.vlgmr.msra.gmra.mxu0 %vm34_vm0, %v2139_v3 }
  0xcf   :  { %1036 = vmatprep.mubr.msk.f32.mxu0 %vm37_vm3, %v2139_v3 }
  0xd2   :  { %1037 = vmatmul.mubr.msk.f32.gmra.mxu0 %vm36_vm2, %v2139_v3 }
 0x140   :  { %v1112_v36 = vpop.f32.mrf.mxu1 }
 0x142   :  { %v1113_v23 = vpop.f32.mrf.mxu1 }
 0x143   :  { %v1114_v56 = vadd.f32 %v1113_v23, %v1112_v36 }
 0x144   :  { %v1115_v58 = vpop.f32.mrf.mxu1 }
 0x146   :  { %v1116_v39 = vpop.f32.mrf.mxu1 }
 0x147   :  { %v1117_v9 = vadd.f32 %v1116_v39, %v1115_v58 }
 0x149   :  { %v1074_v28 = vpop.f32.mrf.mxu0 }
 0x14b   :  { %v1075_v46 = vpop.f32.mrf.mxu0 }
 0x14c   :  { %v1076_v27 = vadd.f32 %v1075_v46, %v1074_v28 }
 0x14e   :  { %v1077_v42 = vpop.f32.mrf.mxu0  ;;  %v436_v3 = vadd.f32 %v1114_v56, %v1076_v27 }
 0x150   :  { %v1078_v55 = vpop.f32.mrf.mxu0 }
 0x151   :  { %v1079_v7 = vadd.f32 %v1078_v55, %v1077_v42 }
 0x153   :  { %v443_v22 = vadd.f32 %v1117_v9, %v1079_v7 }
 0x162   :  { %v1188_v34 = vpop.f32.mrf.mxu1 }
 0x164   :  { %v1189_v41 = vpop.f32.mrf.mxu1 }
 0x165   :  { %v1190_v19 = vadd.f32 %v1189_v41, %v1188_v34 }
 0x167   :  { %v1191_v44 = vpop.f32.mrf.mxu1 }
 0x169   :  { %v1192_v43 = vpop.f32.mrf.mxu1 }
 0x16a   :  { %v1193_v57 = vadd.f32 %v1192_v43, %v1191_v44 }
 0x16c   :  { %v1150_v52 = vpop.f32.mrf.mxu0 }
 0x16e   :  { %v1151_v37 = vpop.f32.mrf.mxu0 }
 0x16f   :  { %v1152_v54 = vadd.f32 %v1151_v37, %v1150_v52 }
 0x171   :  { %v1153_v32 = vpop.f32.mrf.mxu0  ;;  %v581_v15 = vadd.f32 %v1152_v54, %v436_v3 }
 0x173   :  { %v1154_v38 = vpop.f32.mrf.mxu0  ;;  %v698_v25 = vadd.f32 %v1190_v19, %v581_v15 }
 0x174   :  { %v1155_v16 = vadd.f32 %v1154_v38, %v1153_v32 }
 0x176   :  { %v590_v24 = vadd.f32 %v1155_v16, %v443_v22 }
 0x178   :  { %v709_v2 = vadd.f32 %v1193_v57, %v590_v24 }
 0x186   :  { %v1264_v29 = vpop.f32.mrf.mxu1 }
 0x188   :  { %v1265_v8 = vpop.f32.mrf.mxu1 }
 0x189   :  { %v1266_v60 = vadd.f32 %v1265_v8, %v1264_v29 }
 0x18a   :  { %v1267_v20 = vpop.f32.mrf.mxu1 }
 0x18c   :  { %v1268_v62 = vpop.f32.mrf.mxu1 }
 0x18d   :  { %v1269_v5 = vadd.f32 %v1268_v62, %v1267_v20 }
 0x18e   :  { %v1226_v17 = vpop.f32.mrf.mxu0 }
 0x190   :  { %v1227_v21 = vpop.f32.mrf.mxu0 }
 0x191   :  { %v1228_v26 = vadd.f32 %v1227_v21, %v1226_v17 }
 0x192   :  { %v1229_v30 = vpop.f32.mrf.mxu0 }
 0x193   :  { %v877_v61 = vadd.f32 %v1228_v26, %v698_v25 }
 0x194   :  { %v1230_v0 = vpop.f32.mrf.mxu0 }
 0x195   :  { %v988_v1 = vadd.f32 %v1266_v60, %v877_v61  ;;  %v1231_v4 = vadd.f32 %v1230_v0, %v1229_v30 }
 0x197   :  { %v998_v6 = vadd.f32 %v988_v1, %v46_v63  ;;  %v884_v10 = vadd.f32 %v1231_v4, %v709_v2 }
 0x199   :  { %1001 = vst.msk [vmem:[#allocation2] sm:$0xff] %vm16_vm4, %v998_v6  ;;  %v995_v11 = vadd.f32 %v1269_v5, %v884_v10 }
 0x19b   :  { %v999_v12 = vadd.f32 %v995_v11, %v47_v33 }
 0x19d   :  { %1002 = vst.msk [vmem:[#allocation2 + $0x8] sm:$0xff] %vm16_vm4, %v999_v12 }
 0x1a0   :  { %v1006_v13 = vld [vmem:[#allocation2] sm:$0xff] }
 0x1a1   :  { %1008 = vst.msk [vmem:[#allocation3] sm:$0xff] %vm16_vm4, %v1006_v13 }
 0x1a4   :  { %v1007_v18 = vld [vmem:[#allocation2 + $0x8] sm:$0xff] }
 0x1a5   :  { %1009 = vst.msk [vmem:[#allocation3 + $0x8] sm:$0xff] %vm16_vm4, %v1007_v18 }
 0x1a6   :  { %1288 = shalt.err (!%p1285_p4)
}
 0x1a7   :  { %s1303_s21 = smov 128   ;;  %s1304_s22 = smov 8  }
 0x1a8   :  { %1021 = dma.vmem_to_hbm [thread:$0]  %s1016_s19, 256, %s2019_s2, [#allocation4], %s1303_s21, %s1303_s21, %s1304_s22  }
 0x1a9   :  { %1297 = dma.done.wait [#allocation4], 256  }
 0x1aa   :  { %1298 = vsyncadd [#allocation4], 4294967040 }
 0x1ab   :  { %1025 = vsyncpa [#allocation4], 1 }

</bundles_post_ra>
